<compile_context>
chip_gen: v5e
topology: v5e:2x2
jax: 0.10.0
libtpu: 0.0.40
codegen_flags: <defaults>
</compile_context>

<pallas_src>
import functools

import jax
import jax.numpy as jnp
from jax.experimental import pallas as pl
from jax.experimental.pallas import tpu as pltpu


def _round_up(x, m):
    return ((x + m - 1) // m) * m


def _iua_partials_kernel(a_ref, il_ref, ul_ref, out_ref, *,
                         inter_alpha, union_alpha, inv_w, total_rows):
    a = a_ref[...].astype(jnp.float32)    # (bm, w)
    il = il_ref[...].astype(jnp.float32)  # (bm, w)
    ul = ul_ref[...].astype(jnp.float32)  # (bm, w)

    bm = a_ref.shape[0]
    # Tail mask for the (possibly partial) last block: rows >= total_rows are
    # undefined in VMEM and must not contribute to any sum.
    row0 = pl.program_id(0) * bm
    row_ids = jax.lax.broadcasted_iota(jnp.int32, (bm, 1), 0) + row0
    row_mask = row_ids < total_rows                               # (bm, 1)

    # Raw per-row sums, reused for both the betas and the global sums.
    r_il = jnp.sum(il, axis=-1, keepdims=True)                    # (bm, 1)
    r_a = jnp.sum(a, axis=-1, keepdims=True)                      # (bm, 1)

    s_il = jnp.sum(jnp.where(row_mask, r_il, 0.0))                # sum(attns_inter_label)
    s_a = jnp.sum(jnp.where(row_mask, r_a, 0.0))                  # sum(attns)

    inter_beta = r_il * inv_w                                     # mean over w
    union_beta = r_a * inv_w

    # sigmoid(alpha*(x-beta)) == 0.5*(tanh(0.5*alpha*(x-beta)) + 1); the
    # affine 0.5*(.+1) is hoisted out of the per-element product:
    #   sum(min * sigmoid) = 0.5 * (sum(min*tanh) + sum(min))
    th_inter = jnp.tanh((0.5 * inter_alpha) * (il - inter_beta))
    th_union = jnp.tanh((0.5 * union_alpha) * (a - union_beta))
    m_inter = jnp.minimum(a, il)
    m_union = jnp.minimum(a, ul)

    r_mt_i = jnp.sum(m_inter * th_inter, axis=-1, keepdims=True)  # (bm, 1)
    r_m_i = jnp.sum(m_inter, axis=-1, keepdims=True)
    r_mt_u = jnp.sum(m_union * th_union, axis=-1, keepdims=True)
    r_m_u = jnp.sum(m_union, axis=-1, keepdims=True)

    s_mi = 0.5 * (jnp.sum(jnp.where(row_mask, r_mt_i, 0.0))
                  + jnp.sum(jnp.where(row_mask, r_m_i, 0.0)))
    s_mu = 0.5 * (jnp.sum(jnp.where(row_mask, r_mt_u, 0.0))
                  + jnp.sum(jnp.where(row_mask, r_m_u, 0.0)))

    # Scatter the 4 scalars into lanes 0..3 of this block's lane-dense output.
    lane = jax.lax.broadcasted_iota(jnp.int32, (1, 1, 128), 2)
    out_ref[...] = (jnp.where(lane == 0, s_il, 0.0)
                    + jnp.where(lane == 1, s_a, 0.0)
                    + jnp.where(lane == 2, s_mi, 0.0)
                    + jnp.where(lane == 3, s_mu, 0.0))


def a_organs_iua_loss_v2(attns, attns_inter_label, attns_union_label,
                         inter_alpha, union_alpha, smooth=1e-40,
                         block_rows=None):
    n, h, w = attns.shape
    rows = n * h

    # Row-flattened views (reshape is a no-op; row-wise means along w are
    # preserved). Inputs keep their original dtype (bf16 stays bf16 in HBM).
    a2 = attns.reshape(rows, w)
    il2 = attns_inter_label.reshape(rows, w)
    ul2 = attns_union_label.reshape(rows, w)

    min_item = min(jnp.dtype(x.dtype).itemsize for x in (a2, il2, ul2))
    sub_tile = 8 * max(1, 4 // max(min_item, 1))   # 8 (f32), 16 (bf16), 32 (8-bit)

    # Row-block size: ~4 MiB of f32 work per input block (big DMAs, amortizes
    # the ~0.35us/step overhead), multiple of 32 (sublane-packing safe), at
    # least 2 grid steps when there is enough work (v7x has 2 TensorCores).
    if block_rows is None:
        target_bytes = 4 << 20
        block_rows = max(32, target_bytes // (4 * w))
    bm = int(block_rows)
    if rows <= 32:
        bm = _round_up(rows, sub_tile)
    else:
        bm = max(32, (bm // 32) * 32)
        bm = min(bm, _round_up(rows, 32))
        if pl.cdiv(rows, bm) < 2:                 # megacore: give both TCs work
            bm = max(32, _round_up(pl.cdiv(rows, 2), 32))
    num_blocks = pl.cdiv(rows, bm)

    kernel = functools.partial(
        _iua_partials_kernel,
        inter_alpha=float(inter_alpha),
        union_alpha=float(union_alpha),
        inv_w=1.0 / float(w),
        total_rows=int(rows),
    )

    # VMEM budget: 3 inputs x 2 pipeline buffers (at input dtype) plus ~6
    # f32-block's worth of headroom for upcasts / tanh / min intermediates.
    in_bytes = sum(2 * bm * w * x.dtype.itemsize for x in (a2, il2, ul2))
    f32_headroom = 6 * bm * w * 4
    vmem_limit = int(in_bytes) + int(f32_headroom) + (4 << 20)
    vmem_limit = min(max(vmem_limit, 16 << 20), 100 << 20)

    partials = pl.pallas_call(
        kernel,
        out_shape=jax.ShapeDtypeStruct((num_blocks, 1, 128), jnp.float32),
        grid_spec=pltpu.PrefetchScalarGridSpec(
            num_scalar_prefetch=0,
            grid=(num_blocks,),
            in_specs=[
                pl.BlockSpec((bm, w), lambda i: (i, 0)),
                pl.BlockSpec((bm, w), lambda i: (i, 0)),
                pl.BlockSpec((bm, w), lambda i: (i, 0)),
            ],
            out_specs=pl.BlockSpec((1, 1, 128), lambda i: (i, 0, 0)),
        ),
        compiler_params=pltpu.CompilerParams(
            dimension_semantics=("parallel",),
            vmem_limit_bytes=vmem_limit,
        ),
    )(a2, il2, ul2)

    # Tiny final combine in plain JAX.
    totals = jnp.sum(partials[:, 0, 0:4], axis=0)
    sum_il, sum_a = totals[0], totals[1]
    s_min_inter, s_min_union = totals[2], totals[3]
    # NOTE: smooth=1e-40 (the module's default) is subnormal in f32 and is
    # flushed to zero on TPU; kept as-is to preserve the original semantics.
    # If sum_il/sum_a can be exactly 0, pass a normal-range smooth (e.g. 1e-38).
    loss_inter = (sum_il - s_min_inter) / (sum_il + smooth)
    loss_union = (sum_a - s_min_union) / (sum_a + smooth)
    return loss_inter + loss_union


def _reference(attns, il, ul, inter_alpha, union_alpha, smooth=1e-40):
    a = attns.astype(jnp.float32)
    il = il.astype(jnp.float32)
    ul = ul.astype(jnp.float32)
    inter_beta = jnp.mean(il, axis=-1, keepdims=True)
    union_beta = jnp.mean(a, axis=-1, keepdims=True)
    t_inter = 1.0 / (1.0 + jnp.exp(-inter_alpha * (il - inter_beta)))
    t_union = 1.0 / (1.0 + jnp.exp(-union_alpha * (a - union_beta)))
    loss_inter = (jnp.sum(il) - jnp.sum(jnp.minimum(a, il) * t_inter)) \
        / (jnp.sum(il) + smooth)
    loss_union = (jnp.sum(a) - jnp.sum(jnp.minimum(a, ul) * t_union)) \
        / (jnp.sum(a) + smooth)
    return loss_inter + loss_union


if __name__ == "__main__":
    inter_alpha, union_alpha = 10.0, 5.0
    key = jax.random.PRNGKey(0)

    # Test 1: small shape, single full block (16 rows, no tail masking).
    n, h, w = 2, 8, 128
    k1, k2, k3, key = jax.random.split(key, 4)
    attns = jax.nn.softmax(jax.random.normal(k1, (n, h, w), jnp.float32), axis=-1)
    il = jax.random.uniform(k2, (n, h, w), jnp.float32)
    ul = jax.random.uniform(k3, (n, h, w), jnp.float32)
    loss = jax.block_until_ready(
        a_organs_iua_loss_v2(attns, il, ul, inter_alpha, union_alpha))
    ref = _reference(attns, il, ul, inter_alpha, union_alpha)
    assert jnp.allclose(loss, ref, rtol=1e-4, atol=1e-6), (loss, ref)

    # Test 2: 60 rows -> auto block selection gives 2 blocks of 32 rows and
    # exercises the in-kernel tail masking (rows 60..63 of the last block).
    n, h, w = 3, 20, 256
    k1, k2, k3, key = jax.random.split(key, 4)
    attns = jax.nn.softmax(jax.random.normal(k1, (n, h, w), jnp.float32), axis=-1)
    il = jax.random.uniform(k2, (n, h, w), jnp.float32)
    ul = jax.random.uniform(k3, (n, h, w), jnp.float32)
    loss = jax.block_until_ready(
        a_organs_iua_loss_v2(attns, il, ul, inter_alpha, union_alpha))
    ref = _reference(attns, il, ul, inter_alpha, union_alpha)
    assert jnp.allclose(loss, ref, rtol=1e-4, atol=1e-6), (loss, ref)

    # Test 3: bf16 inputs kept in bf16 end-to-end (upcast happens in-kernel),
    # explicit block_rows=32 -> 3 blocks over 74 rows, last block masked.
    n, h, w = 2, 37, 128
    k1, k2, k3, key = jax.random.split(key, 4)
    attns = jax.nn.softmax(jax.random.normal(k1, (n, h, w), jnp.float32),
                           axis=-1).astype(jnp.bfloat16)
    il = jax.random.uniform(k2, (n, h, w), jnp.float32).astype(jnp.bfloat16)
    ul = jax.random.uniform(k3, (n, h, w), jnp.float32).astype(jnp.bfloat16)
    loss = jax.block_until_ready(
        a_organs_iua_loss_v2(attns, il, ul, inter_alpha, union_alpha,
                             block_rows=32))
    ref = _reference(attns, il, ul, inter_alpha, union_alpha)
    assert jnp.allclose(loss, ref, rtol=1e-3, atol=1e-5), (loss, ref)

    print("KERNEL_OK")
</pallas_src>

<mosaic_0001>
module attributes {stable_mosaic.version = 11 : i64} {
  func.func @_iua_partials_kernel(%arg0: i32, %arg1: memref<16x128xf32, #tpu.memory_space<vmem>>, %arg2: memref<16x128xf32, #tpu.memory_space<vmem>>, %arg3: memref<16x128xf32, #tpu.memory_space<vmem>>, %arg4: memref<1x1x128xf32, #tpu.memory_space<vmem>>) attributes {dimension_semantics = [#tpu.dimension_semantics<parallel>], iteration_bounds = array<i64: 1>, scalar_prefetch = 0 : i64, scratch_operands = 0 : i64, tpu.core_type = #tpu.core_type<tc>, window_params = [{transform_indices = @transform_0, window_bounds = array<i64: 16, 128>}, {transform_indices = @transform_1, window_bounds = array<i64: 16, 128>}, {transform_indices = @transform_2, window_bounds = array<i64: 16, 128>}, {transform_indices = @transform_3, window_bounds = array<i64: 1, 1, 128>}]} {
    %c0 = arith.constant 0 : index
    %c0_0 = arith.constant 0 : index
    %0 = vector.load %arg1[%c0, %c0_0] : memref<16x128xf32, #tpu.memory_space<vmem>>, vector<16x128xf32>
    %c0_1 = arith.constant 0 : index
    %c0_2 = arith.constant 0 : index
    %1 = vector.load %arg2[%c0_1, %c0_2] : memref<16x128xf32, #tpu.memory_space<vmem>>, vector<16x128xf32>
    %c0_3 = arith.constant 0 : index
    %c0_4 = arith.constant 0 : index
    %2 = vector.load %arg3[%c0_3, %c0_4] : memref<16x128xf32, #tpu.memory_space<vmem>>, vector<16x128xf32>
    %c16_i32 = arith.constant 16 : i32
    %3 = arith.muli %arg0, %c16_i32 : i32
    %4 = tpu.iota {dimensions = array<i32: 0>} : vector<16x1xi32>
    %5 = vector.broadcast %3 : i32 to vector<16x1xi32>
    %6 = arith.addi %4, %5 : vector<16x1xi32>
    %c16_i32_5 = arith.constant 16 : i32
    %7 = vector.broadcast %c16_i32_5 : i32 to vector<16x1xi32>
    %8 = arith.cmpi slt, %6, %7 : vector<16x1xi32>
    %cst = arith.constant dense<0.000000e+00> : vector<16xf32>
    %9 = vector.multi_reduction <add>, %1, %cst [1] : vector<16x128xf32> to vector<16xf32>
    %10 = vector.shape_cast %9 : vector<16xf32> to vector<16x1xf32>
    %cst_6 = arith.constant dense<0.000000e+00> : vector<16xf32>
    %11 = vector.multi_reduction <add>, %0, %cst_6 [1] : vector<16x128xf32> to vector<16xf32>
    %12 = vector.shape_cast %11 : vector<16xf32> to vector<16x1xf32>
    %cst_7 = arith.constant 0.000000e+00 : f32
    %13 = vector.broadcast %cst_7 : f32 to vector<16x1xf32>
    %14 = arith.select %8, %10, %13 : vector<16x1xi1>, vector<16x1xf32>
    %15 = vector.shape_cast %14 : vector<16x1xf32> to vector<1x16x1xf32>
    %cst_8 = arith.constant dense<0.000000e+00> : vector<1xf32>
    %16 = vector.multi_reduction <add>, %15, %cst_8 [1, 2] : vector<1x16x1xf32> to vector<1xf32>
    %17 = vector.shape_cast %16 : vector<1xf32> to vector<1x1x1xf32>
    %18 = vector.extract %17[0, 0, 0] : f32 from vector<1x1x1xf32>
    %cst_9 = arith.constant 0.000000e+00 : f32
    %19 = vector.broadcast %cst_9 : f32 to vector<16x1xf32>
    %20 = arith.select %8, %12, %19 : vector<16x1xi1>, vector<16x1xf32>
    %21 = vector.shape_cast %20 : vector<16x1xf32> to vector<1x16x1xf32>
    %cst_10 = arith.constant dense<0.000000e+00> : vector<1xf32>
    %22 = vector.multi_reduction <add>, %21, %cst_10 [1, 2] : vector<1x16x1xf32> to vector<1xf32>
    %23 = vector.shape_cast %22 : vector<1xf32> to vector<1x1x1xf32>
    %24 = vector.extract %23[0, 0, 0] : f32 from vector<1x1x1xf32>
    %cst_11 = arith.constant 7.812500e-03 : f32
    %25 = vector.broadcast %cst_11 : f32 to vector<16x1xf32>
    %26 = arith.mulf %10, %25 : vector<16x1xf32>
    %cst_12 = arith.constant 7.812500e-03 : f32
    %27 = vector.broadcast %cst_12 : f32 to vector<16x1xf32>
    %28 = arith.mulf %12, %27 : vector<16x1xf32>
    %29 = vector.broadcast %26 : vector<16x1xf32> to vector<16x128xf32>
    %30 = arith.subf %1, %29 : vector<16x128xf32>
    %cst_13 = arith.constant 5.000000e+00 : f32
    %31 = vector.broadcast %cst_13 : f32 to vector<16x128xf32>
    %32 = arith.mulf %31, %30 : vector<16x128xf32>
    %33 = math.tanh %32 : vector<16x128xf32>
    %34 = vector.broadcast %28 : vector<16x1xf32> to vector<16x128xf32>
    %35 = arith.subf %0, %34 : vector<16x128xf32>
    %cst_14 = arith.constant 2.500000e+00 : f32
    %36 = vector.broadcast %cst_14 : f32 to vector<16x128xf32>
    %37 = arith.mulf %36, %35 : vector<16x128xf32>
    %38 = math.tanh %37 : vector<16x128xf32>
    %39 = arith.minimumf %0, %1 : vector<16x128xf32>
    %40 = arith.minimumf %0, %2 : vector<16x128xf32>
    %41 = arith.mulf %39, %33 : vector<16x128xf32>
    %cst_15 = arith.constant dense<0.000000e+00> : vector<16xf32>
    %42 = vector.multi_reduction <add>, %41, %cst_15 [1] : vector<16x128xf32> to vector<16xf32>
    %43 = vector.shape_cast %42 : vector<16xf32> to vector<16x1xf32>
    %cst_16 = arith.constant dense<0.000000e+00> : vector<16xf32>
    %44 = vector.multi_reduction <add>, %39, %cst_16 [1] : vector<16x128xf32> to vector<16xf32>
    %45 = vector.shape_cast %44 : vector<16xf32> to vector<16x1xf32>
    %46 = arith.mulf %40, %38 : vector<16x128xf32>
    %cst_17 = arith.constant dense<0.000000e+00> : vector<16xf32>
    %47 = vector.multi_reduction <add>, %46, %cst_17 [1] : vector<16x128xf32> to vector<16xf32>
    %48 = vector.shape_cast %47 : vector<16xf32> to vector<16x1xf32>
    %cst_18 = arith.constant dense<0.000000e+00> : vector<16xf32>
    %49 = vector.multi_reduction <add>, %40, %cst_18 [1] : vector<16x128xf32> to vector<16xf32>
    %50 = vector.shape_cast %49 : vector<16xf32> to vector<16x1xf32>
    %cst_19 = arith.constant 0.000000e+00 : f32
    %51 = vector.broadcast %cst_19 : f32 to vector<16x1xf32>
    %52 = arith.select %8, %43, %51 : vector<16x1xi1>, vector<16x1xf32>
    %53 = vector.shape_cast %52 : vector<16x1xf32> to vector<1x16x1xf32>
    %cst_20 = arith.constant dense<0.000000e+00> : vector<1xf32>
    %54 = vector.multi_reduction <add>, %53, %cst_20 [1, 2] : vector<1x16x1xf32> to vector<1xf32>
    %55 = vector.shape_cast %54 : vector<1xf32> to vector<1x1x1xf32>
    %56 = vector.extract %55[0, 0, 0] : f32 from vector<1x1x1xf32>
    %cst_21 = arith.constant 0.000000e+00 : f32
    %57 = vector.broadcast %cst_21 : f32 to vector<16x1xf32>
    %58 = arith.select %8, %45, %57 : vector<16x1xi1>, vector<16x1xf32>
    %59 = vector.shape_cast %58 : vector<16x1xf32> to vector<1x16x1xf32>
    %cst_22 = arith.constant dense<0.000000e+00> : vector<1xf32>
    %60 = vector.multi_reduction <add>, %59, %cst_22 [1, 2] : vector<1x16x1xf32> to vector<1xf32>
    %61 = vector.shape_cast %60 : vector<1xf32> to vector<1x1x1xf32>
    %62 = vector.extract %61[0, 0, 0] : f32 from vector<1x1x1xf32>
    %63 = arith.addf %56, %62 : f32
    %cst_23 = arith.constant 5.000000e-01 : f32
    %64 = arith.mulf %cst_23, %63 : f32
    %cst_24 = arith.constant 0.000000e+00 : f32
    %65 = vector.broadcast %cst_24 : f32 to vector<16x1xf32>
    %66 = arith.select %8, %48, %65 : vector<16x1xi1>, vector<16x1xf32>
    %67 = vector.shape_cast %66 : vector<16x1xf32> to vector<1x16x1xf32>
    %cst_25 = arith.constant dense<0.000000e+00> : vector<1xf32>
    %68 = vector.multi_reduction <add>, %67, %cst_25 [1, 2] : vector<1x16x1xf32> to vector<1xf32>
    %69 = vector.shape_cast %68 : vector<1xf32> to vector<1x1x1xf32>
    %70 = vector.extract %69[0, 0, 0] : f32 from vector<1x1x1xf32>
    %cst_26 = arith.constant 0.000000e+00 : f32
    %71 = vector.broadcast %cst_26 : f32 to vector<16x1xf32>
    %72 = arith.select %8, %50, %71 : vector<16x1xi1>, vector<16x1xf32>
    %73 = vector.shape_cast %72 : vector<16x1xf32> to vector<1x16x1xf32>
    %cst_27 = arith.constant dense<0.000000e+00> : vector<1xf32>
    %74 = vector.multi_reduction <add>, %73, %cst_27 [1, 2] : vector<1x16x1xf32> to vector<1xf32>
    %75 = vector.shape_cast %74 : vector<1xf32> to vector<1x1x1xf32>
    %76 = vector.extract %75[0, 0, 0] : f32 from vector<1x1x1xf32>
    %77 = arith.addf %70, %76 : f32
    %cst_28 = arith.constant 5.000000e-01 : f32
    %78 = arith.mulf %cst_28, %77 : f32
    %79 = tpu.iota {dimensions = array<i32: 2>} : vector<1x1x128xi32>
    %c0_i32 = arith.constant 0 : i32
    %80 = vector.broadcast %c0_i32 : i32 to vector<1x1x128xi32>
    %81 = arith.cmpi eq, %79, %80 : vector<1x1x128xi32>
    %cst_29 = arith.constant 0.000000e+00 : f32
    %82 = vector.broadcast %18 : f32 to vector<1x1x128xf32>
    %83 = vector.broadcast %cst_29 : f32 to vector<1x1x128xf32>
    %84 = arith.select %81, %82, %83 : vector<1x1x128xi1>, vector<1x1x128xf32>
    %c1_i32 = arith.constant 1 : i32
    %85 = vector.broadcast %c1_i32 : i32 to vector<1x1x128xi32>
    %86 = arith.cmpi eq, %79, %85 : vector<1x1x128xi32>
    %cst_30 = arith.constant 0.000000e+00 : f32
    %87 = vector.broadcast %24 : f32 to vector<1x1x128xf32>
    %88 = vector.broadcast %cst_30 : f32 to vector<1x1x128xf32>
    %89 = arith.select %86, %87, %88 : vector<1x1x128xi1>, vector<1x1x128xf32>
    %90 = arith.addf %84, %89 : vector<1x1x128xf32>
    %c2_i32 = arith.constant 2 : i32
    %91 = vector.broadcast %c2_i32 : i32 to vector<1x1x128xi32>
    %92 = arith.cmpi eq, %79, %91 : vector<1x1x128xi32>
    %cst_31 = arith.constant 0.000000e+00 : f32
    %93 = vector.broadcast %64 : f32 to vector<1x1x128xf32>
    %94 = vector.broadcast %cst_31 : f32 to vector<1x1x128xf32>
    %95 = arith.select %92, %93, %94 : vector<1x1x128xi1>, vector<1x1x128xf32>
    %96 = arith.addf %90, %95 : vector<1x1x128xf32>
    %c3_i32 = arith.constant 3 : i32
    %97 = vector.broadcast %c3_i32 : i32 to vector<1x1x128xi32>
    %98 = arith.cmpi eq, %79, %97 : vector<1x1x128xi32>
    %cst_32 = arith.constant 0.000000e+00 : f32
    %99 = vector.broadcast %78 : f32 to vector<1x1x128xf32>
    %100 = vector.broadcast %cst_32 : f32 to vector<1x1x128xf32>
    %101 = arith.select %98, %99, %100 : vector<1x1x128xi1>, vector<1x1x128xf32>
    %102 = arith.addf %96, %101 : vector<1x1x128xf32>
    %c0_33 = arith.constant 0 : index
    %c0_34 = arith.constant 0 : index
    %c0_35 = arith.constant 0 : index
    %103 = vector.load %arg4[%c0_33, %c0_34, %c0_35] : memref<1x1x128xf32, #tpu.memory_space<vmem>>, vector<1x1x128xf32>
    tpu.vector_store %arg4[%c0_33, %c0_34, %c0_35], %102 {strides = array<i32>} : memref<1x1x128xf32, #tpu.memory_space<vmem>>, vector<1x1x128xf32>,
    return
  }
  func.func @transform_0(%arg0: i32) -> (i32, i32) {
    %c0_i32 = arith.constant 0 : i32
    %c0_i32_0 = arith.constant 0 : i32
    return %arg0, %c0_i32 : i32, i32
  }
  func.func @transform_1(%arg0: i32) -> (i32, i32) {
    %c0_i32 = arith.constant 0 : i32
    %c0_i32_0 = arith.constant 0 : i32
    return %arg0, %c0_i32 : i32, i32
  }
  func.func @transform_2(%arg0: i32) -> (i32, i32) {
    %c0_i32 = arith.constant 0 : i32
    %c0_i32_0 = arith.constant 0 : i32
    return %arg0, %c0_i32 : i32, i32
  }
  func.func @transform_3(%arg0: i32) -> (i32, i32, i32) {
    %c0_i32 = arith.constant 0 : i32
    %c0_i32_0 = arith.constant 0 : i32
    %c0_i32_1 = arith.constant 0 : i32
    return %arg0, %c0_i32, %c0_i32_0 : i32, i32, i32
  }
}

</mosaic_0001>

<bundles_post_ra>
// kernel: tpu_custom_call.1
= control target key start
LH: loop header
LB: loop body
LE: loop exit
PB: predicated region body
PF: predicated region fallthrough
CT: control target
= control target key end

     0   :  { %8 = vsyncpa [#allocation3], 0  ;;  %s428_s0 = inlined_call_operand.hbm [shape: f32[16,128], index: 0, kind: input, shape index: {}]   ;;  %s429_s1 = inlined_call_operand.hbm [shape: f32[16,128], index: 1, kind: input, shape index: {}]   ;;  %s430_s2 = inlined_call_operand.hbm [shape: f32[16,128], index: 2, kind: input, shape index: {}]   ;;  %s431_s3 = inlined_call_operand.hbm [shape: f32[1,1,128], index: 3, kind: output, shape index: {}]  }
   0x1   :  { %9 = vsyncpa [#allocation6], 0 }
   0x2   :  { %10 = vsyncpa [#allocation4], 0  ;;  %s28_s14 = sshll.u32 %s429_s1, 4  ;;  %s378_s15 = smov [#allocation5]   ;;  %s29_s14 = int_to_ptr.hbm [resolvable:$true] %s28_s14 }
   0x3   :  { %s30_s16 = sshll.u32 %s378_s15, 4  ;;  %s15_s19 = sshll.u32 %s428_s0, 4  ;;  %s31_s16 = int_to_ptr.vmem [resolvable:$true] %s30_s16  ;;  %s16_s19 = int_to_ptr.hbm [resolvable:$true] %s15_s19 }
   0x4   :  { %s379_s20 = smov 128   ;;  %s380_s21 = smov 8  }
   0x5   :  { %36 = dma.hbm_to_vmem [thread:$0]  %s29_s14, 256, %s31_s16, [#allocation6], %s379_s20, %s379_s20, %s380_s21  }
   0x6   :  { %s381_s22 = smov [#allocation2]   ;;  %s41_s26 = sshll.u32 %s430_s2, 4  ;;  %s42_s26 = int_to_ptr.hbm [resolvable:$true] %s41_s26 }
   0x7   :  { %s17_s23 = sshll.u32 %s381_s22, 4  ;;  %s382_s1 = smov [#allocation7]   ;;  %s18_s23 = int_to_ptr.vmem [resolvable:$true] %s17_s23 }
   0x8   :  { %23 = dma.hbm_to_vmem [thread:$0]  %s16_s19, 256, %s18_s23, [#allocation3], %s379_s20, %s379_s20, %s380_s21  }
   0x9   :  { %s43_s27 = sshll.u32 %s382_s1, 4  ;;  %s44_s27 = int_to_ptr.vmem [resolvable:$true] %s43_s27 }
   0xa   :  { %49 = dma.hbm_to_vmem [thread:$0]  %s42_s26, 256, %s44_s27, [#allocation6], %s379_s20, %s379_s20, %s380_s21  }
   0xb   :  { %372 = dma.done.wait [#allocation3], 256  }
   0xc   :  { %373 = vsyncadd [#allocation3], 4294967040 }
   0xd   :  { %374 = dma.done.wait [#allocation6], 512  }
   0xe   :  { %375 = vsyncadd [#allocation6], 4294966784  ;;  %v64_v0 = vld [vmem:[#allocation5] sm:$0xff]  ;;  %v62_v1 = vld [vmem:[#allocation2] sm:$0xff]  ;;  %vm87_vm0 = vcmask 7168   ;;  %s383_s9 = smov [#allocation8]  }
   0xf   :  { %77 = vadd.xlane.f32.xlu0 %v64_v0  ;;  %81 = vadd.xlane.f32.xlu1 %v62_v1  ;;  %v65_v2 = vld [vmem:[#allocation5 + $0x8] sm:$0xff]  ;;  %v63_v3 = vld [vmem:[#allocation2 + $0x8] sm:$0xff]  ;;  %v66_v5 = vld [vmem:[#allocation7] sm:$0xff]  ;;  %v130_v7 = vmin.f32 %v62_v1, %v64_v0  ;;  %s237_s10 = sshll.u32 %s383_s9, 4  ;;  %s239_s13 = sshll.u32 %s431_s3, 4  ;;  %s238_s10 = int_to_ptr.vmem [resolvable:$true] %s237_s10  ;;  %s240_s13 = int_to_ptr.hbm [resolvable:$true] %s239_s13 }
  0x10   :  { %v131_v4 = vmin.f32 %v63_v3, %v65_v2  ;;  %v132_v6 = vmin.f32 %v62_v1, %v66_v5  ;;  %v67_v29 = vld [vmem:[#allocation7 + $0x8] sm:$0xff] }
  0x11   :  { %v133_v30 = vmin.f32 %v63_v3, %v67_v29 }
  0x17   :  { %79 = vadd.xlane.f32.xlu0 %v65_v2  ;;  %83 = vadd.xlane.f32.xlu1 %v63_v3 }
  0x1f   :  { %142 = vadd.xlane.f32.xlu1 %v131_v4  ;;  %140 = vadd.xlane.f32.xlu0 %v130_v7 }
  0x27   :  { %150 = vadd.xlane.f32.xlu1 %v132_v6 }
  0x82   :  { %v78_v8 = vpop.xlane.xlu0 %77  ;;  %v82_v9 = vpop.xlane.xlu1 %81 }
  0x83   :  { %v114_v10 = vmul.f32 0.0078125, %v78_v8  ;;  %v102_v13 = vsel %vm87_vm0, %v82_v9, 0.0  ;;  %v116_v14 = vmul.f32 0.0078125, %v82_v9  ;;  %v88_v38 = vsel %vm87_vm0, %v78_v8, 0.0 }
  0x85   :  { %v118_v11 = vsub.f32 %v64_v0, %v114_v10  ;;  %v124_v21 = vsub.f32 %v62_v1, %v116_v14 }
  0x87   :  { %v120_v12 = vmul.f32 5.0, %v118_v11  ;;  %v126_v28 = vmul.f32 2.5, %v124_v21 }
  0x89   :  { %268 = vtanh.f32 %v120_v12 }
  0x8a   :  { %v80_v15 = vpop.xlane.xlu0 %79  ;;  %v84_v16 = vpop.xlane.xlu1 %83 }
  0x8b   :  { %v115_v17 = vmul.f32 0.0078125, %v80_v15  ;;  %v103_v18 = vsel %vm87_vm0, %v84_v16, 0.0  ;;  %v117_v19 = vmul.f32 0.0078125, %v84_v16  ;;  %v89_v36 = vsel %vm87_vm0, %v80_v15, 0.0 }
  0x8c   :  { %v104_v20 = vadd.f32 %v103_v18, %v102_v13  ;;  %v90_v39 = vadd.f32 %v89_v36, %v88_v38  ;;  %v214_v38 = vlaneseq }
  0x8d   :  { %v119_v22 = vsub.f32 %v65_v2, %v115_v17  ;;  %v125_v23 = vsub.f32 %v63_v3, %v117_v19 }
  0x8e   :  { %105 = vadd.xlane.f32.xlu1 %v104_v20 }
  0x8f   :  { %v269_v24 = vpop.eup %268  ;;  %v121_v25 = vmul.f32 5.0, %v119_v22  ;;  %v127_v26 = vmul.f32 2.5, %v125_v23 }
  0x90   :  { %v134_v27 = vmul.f32 %v269_v24, %v130_v7 }
  0x91   :  { %270 = vtanh.f32 %v121_v25 }
  0x92   :  { %272 = vtanh.f32 %v127_v26  ;;  %136 = vadd.xlane.f32.xlu2 %v134_v27  ;;  %v143_v40 = vpop.xlane.xlu1 %142  ;;  %v141_v41 = vpop.xlane.xlu0 %140 }
  0x93   :  { %274 = vtanh.f32 %v126_v28  ;;  %v171_v42 = vsel %vm87_vm0, %v143_v40, 0.0  ;;  %v170_v43 = vsel %vm87_vm0, %v141_v41, 0.0 }
  0x94   :  { %v172_v44 = vadd.f32 %v171_v42, %v170_v43 }
  0x97   :  { %v271_v31 = vpop.eup %270 }
  0x98   :  { %v273_v32 = vpop.eup %272  ;;  %v135_v33 = vmul.f32 %v271_v31, %v131_v4 }
  0x99   :  { %v145_v34 = vmul.f32 %v273_v32, %v133_v30  ;;  %v275_v35 = vpop.eup %274 }
  0x9a   :  { %138 = vadd.xlane.f32.xlu2 %v135_v33  ;;  %v144_v37 = vmul.f32 %v275_v35, %v132_v6  ;;  %v151_v45 = vpop.xlane.xlu1 %150 }
  0x9b   :  { %148 = vadd.xlane.f32.xlu0 %v145_v34  ;;  %v200_v1 = vsel %vm87_vm0, %v151_v45, 0.0 }
  0xa2   :  { %146 = vadd.xlane.f32.xlu2 %v144_v37 }
  0xa3   :  { %91 = vadd.xlane.f32.xlu0 %v90_v39  ;;  %v215_v39 = vand.u32 127, %v214_v38 }
  0xa5   :  { %vm216_vm1 = vcmp.eq.s32.totalorder %v215_v39, 0  ;;  %vm219_vm2 = vcmp.eq.s32.totalorder %v215_v39, 1  ;;  %vm223_vm3 = vcmp.eq.s32.totalorder %v215_v39, 2  ;;  %vm227_vm4 = vcmp.eq.s32.totalorder %v215_v39, 3 }
  0xaa   :  { %152 = vadd.xlane.f32.xlu2 %v133_v30 }
  0xab   :  { %173 = vadd.xlane.f32.xlu0 %v172_v44 }
 0x101   :  { %v106_v47 = vpop.xlane.xlu1 %105 }
 0x102   :  { %v107_v49 = vrot.slane %v106_v47, 4 }
 0x104   :  { %v108_v54 = vadd.f32 %v107_v49, %v106_v47 }
 0x105   :  { %v137_v46 = vpop.xlane.xlu2 %136 }
 0x106   :  { %v156_v50 = vsel %vm87_vm0, %v137_v46, 0.0  ;;  %v109_v57 = vrot.slane %v108_v54, 2 }
 0x108   :  { %v110_v63 = vadd.f32 %v109_v57, %v108_v54 }
 0x10a   :  { %v111_v5 = vrot.slane %v110_v63, 1 }
 0x10c   :  { %v112_v9 = vadd.f32 %v111_v5, %v110_v63 }
 0x10d   :  { %v139_v48 = vpop.xlane.xlu2 %138 }
 0x10e   :  { %v149_v51 = vpop.xlane.xlu0 %148  ;;  %v157_v52 = vsel %vm87_vm0, %v139_v48, 0.0 }
 0x10f   :  { %v158_v53 = vadd.f32 %v157_v52, %v156_v50  ;;  %v187_v55 = vsel %vm87_vm0, %v149_v51, 0.0 }
 0x111   :  { %159 = vadd.xlane.f32.xlu2 %v158_v53 }
 0x115   :  { %v147_v56 = vpop.xlane.xlu2 %146 }
 0x116   :  { %v92_v58 = vpop.xlane.xlu0 %91  ;;  %v186_v59 = vsel %vm87_vm0, %v147_v56, 0.0 }
 0x117   :  { %v93_v60 = vrot.slane %v92_v58, 4  ;;  %v188_v61 = vadd.f32 %v187_v55, %v186_v59 }
 0x119   :  { %v94_v62 = vadd.f32 %v93_v60, %v92_v58  ;;  %189 = vadd.xlane.f32.xlu1 %v188_v61 }
 0x11b   :  { %v95_v0 = vrot.slane %v94_v62, 2 }
 0x11d   :  { %v153_v2 = vpop.xlane.xlu2 %152  ;;  %v96_v3 = vadd.f32 %v95_v0, %v94_v62 }
 0x11e   :  { %v201_v4 = vsel %vm87_vm0, %v153_v2, 0.0  ;;  %v174_v10 = vpop.xlane.xlu0 %173 }
 0x11f   :  { %v202_v6 = vadd.f32 %v201_v4, %v200_v1  ;;  %v97_v7 = vrot.slane %v96_v3, 1  ;;  %v175_v11 = vrot.slane %v174_v10, 4 }
 0x121   :  { %203 = vadd.xlane.f32.xlu2 %v202_v6  ;;  %v98_v8 = vadd.f32 %v97_v7, %v96_v3  ;;  %v176_v12 = vadd.f32 %v175_v11, %v174_v10 }
 0x123   :  { %250 = vpush %v98_v8  ;;  %v177_v13 = vrot.slane %v176_v12, 2 }
 0x124   :  { %252 = vpush %v112_v9 }
 0x125   :  { %v178_v16 = vadd.f32 %v177_v13, %v176_v12 }
 0x127   :  { %v179_v19 = vrot.slane %v178_v16, 1 }
 0x129   :  { %v180_v24 = vadd.f32 %v179_v19, %v178_v16 }
 0x154   :  { %s251_s0 = spop %250 }
 0x155   :  { %s253_s2 = spop %252  ;;  %v217_v40 = vstv %s251_s0 }
 0x156   :  { %v220_v41 = vstv %s253_s2  ;;  %v218_v43 = vsel %vm216_vm1, %v217_v40, 0.0 }
 0x157   :  { %v221_v44 = vsel %vm219_vm2, %v220_v41, 0.0 }
 0x158   :  { %v222_v46 = vadd.f32 %v221_v44, %v218_v43 }
 0x184   :  { %v160_v14 = vpop.xlane.xlu2 %159 }
 0x185   :  { %v161_v15 = vrot.slane %v160_v14, 4 }
 0x187   :  { %v162_v17 = vadd.f32 %v161_v15, %v160_v14 }
 0x189   :  { %v163_v18 = vrot.slane %v162_v17, 2 }
 0x18b   :  { %v164_v20 = vadd.f32 %v163_v18, %v162_v17 }
 0x18c   :  { %v190_v21 = vpop.xlane.xlu1 %189 }
 0x18d   :  { %v191_v22 = vrot.slane %v190_v21, 4  ;;  %v165_v23 = vrot.slane %v164_v20, 1 }
 0x18f   :  { %v192_v25 = vadd.f32 %v191_v22, %v190_v21  ;;  %v166_v26 = vadd.f32 %v165_v23, %v164_v20 }
 0x191   :  { %v193_v27 = vrot.slane %v192_v25, 2  ;;  %254 = vpush %v166_v26 }
 0x192   :  { %256 = vpush %v180_v24 }
 0x193   :  { %v194_v28 = vadd.f32 %v193_v27, %v192_v25 }
 0x194   :  { %v204_v29 = vpop.xlane.xlu2 %203 }
 0x195   :  { %v205_v30 = vrot.slane %v204_v29, 4  ;;  %v195_v31 = vrot.slane %v194_v28, 1 }
 0x197   :  { %v206_v32 = vadd.f32 %v205_v30, %v204_v29  ;;  %v196_v33 = vadd.f32 %v195_v31, %v194_v28 }
 0x199   :  { %v207_v34 = vrot.slane %v206_v32, 2  ;;  %258 = vpush %v196_v33 }
 0x19b   :  { %v208_v35 = vadd.f32 %v207_v34, %v206_v32 }
 0x19d   :  { %v209_v36 = vrot.slane %v208_v35, 1 }
 0x19f   :  { %v210_v37 = vadd.f32 %v209_v36, %v208_v35 }
 0x1a1   :  { %260 = vpush %v210_v37 }
 0x1c2   :  { %s255_s28 = spop %254 }
 0x1c3   :  { %s257_s29 = spop %256 }
 0x1c4   :  { %s182_s30 = sadd.f32 %s257_s29, %s255_s28 }
 0x1c6   :  { %s183_s4 = smul.f32 0.5, %s182_s30 }
 0x1c8   :  { %v224_v42 = vstv %s183_s4 }
 0x1c9   :  { %v225_v45 = vsel %vm223_vm3, %v224_v42, 0.0 }
 0x1ca   :  { %s259_s5 = spop %258  ;;  %v226_v47 = vadd.f32 %v225_v45, %v222_v46 }
 0x1d2   :  { %s261_s6 = spop %260 }
 0x1d3   :  { %s212_s7 = sadd.f32 %s261_s6, %s259_s5 }
 0x1d5   :  { %s213_s8 = smul.f32 0.5, %s212_s7 }
 0x1d7   :  { %v228_v48 = vstv %s213_s8 }
 0x1d8   :  { %v229_v49 = vsel %vm227_vm4, %v228_v48, 0.0 }
 0x1d9   :  { %v230_v50 = vadd.f32 %v229_v49, %v226_v47 }
 0x1db   :  { %231 = vst [vmem:[#allocation8] sm:$0x1] %v230_v50 }
 0x1dc   :  { %242 = dma.vmem_to_hbm [thread:$0]  %s238_s10, 16, %s240_s13, [#allocation4]  }
 0x1dd   :  { %376 = dma.done.wait [#allocation4], 16  }
 0x1de   :  { %377 = vsyncadd [#allocation4], 4294967280 }
 0x1df   :  { %247 = vsyncpa [#allocation3], 1 }
 0x1e0   :  { %248 = vsyncpa [#allocation6], 1 }
 0x1e1   :  { %249 = vsyncpa [#allocation4], 1 }

</bundles_post_ra>
